<compile_context>
chip_gen: v7x
topology: tpu7x:2x2x1
jax: 0.10.0
libtpu: 0.0.40
codegen_flags: <defaults>
</compile_context>

<pallas_src>
import functools

import jax
import jax.numpy as jnp
from jax.experimental import pallas as pl
from jax.experimental.pallas import tpu as pltpu

_VMEM_LIMIT = 32 * 1024 * 1024  # explicit scoped-VMEM cap (safe on v5e/v6e/v7x)


def _full_spec(a):
    """BlockSpec for a grid-invariant (weight) array on a 1-D grid."""
    return pl.BlockSpec(a.shape, lambda b, _n=a.ndim: (0,) * _n)


def _pick_row_tile(m):
    for c in (512, 256, 128, 64, 32, 16, 8):
        if m % c == 0:
            return c
    return m


# ----------------------------------------------------------------------------
# Row-tiled dense kernel (used for the BERT text-encoder stand-in).
# ----------------------------------------------------------------------------
def _dense_kernel(x_ref, w_ref, b_ref, o_ref, *, act):
    y = jnp.dot(x_ref[...], w_ref[...], preferred_element_type=jnp.float32) + b_ref[...]
    if act == "tanh":
        y = jnp.tanh(y)
    elif act == "relu":
        y = jnp.maximum(y, 0.0)
    o_ref[...] = y


def pallas_dense(x, w, b, act=None):
    """y = act(x @ w + b). x: (..., K), w: (K, N), b: (1, N). Row-tiled."""
    lead = x.shape[:-1]
    K = x.shape[-1]
    N = w.shape[-1]
    x2 = x.reshape(-1, K)
    M = x2.shape[0]
    tm = _pick_row_tile(M)
    y = pl.pallas_call(
        functools.partial(_dense_kernel, act=act),
        out_shape=jax.ShapeDtypeStruct((M, N), jnp.float32),
        grid=(M // tm,),
        in_specs=[
            pl.BlockSpec((tm, K), lambda i: (i, 0)),
            pl.BlockSpec((K, N), lambda i: (0, 0)),
            pl.BlockSpec((1, N), lambda i: (0, 0)),
        ],
        out_specs=pl.BlockSpec((tm, N), lambda i: (i, 0)),
        compiler_params=pltpu.CompilerParams(
            dimension_semantics=("parallel",),
            vmem_limit_bytes=_VMEM_LIMIT),
    )(x2, w, b)
    return y.reshape(*lead, N)


# ----------------------------------------------------------------------------
# Fused conformer_cat stand-in: in-proj + nblocks residual tanh blocks + the
# channel concatenation of the per-block outputs, all in one kernel launch.
# ----------------------------------------------------------------------------
def _conformer_cat_kernel(x_ref, win_ref, bin_ref, bw_ref, bb_ref, o_ref, *, nblocks):
    h = jnp.tanh(
        jnp.dot(x_ref[...], win_ref[...], preferred_element_type=jnp.float32)
        + bin_ref[...])
    outs = []
    for i in range(nblocks):                                   # static block loop
        h = h + jnp.tanh(
            jnp.dot(h, bw_ref[i], preferred_element_type=jnp.float32) + bb_ref[i])
        outs.append(h)
    o_ref[...] = jnp.concatenate(outs, axis=-1)                # (T, nblocks*H), one store


def conformer_cat_fused(x, cp):
    B, T, Din = x.shape
    nblocks, H, _ = cp["blk_w"].shape
    ws = (cp["in_w"], cp["in_b"], cp["blk_w"], cp["blk_b"])
    return pl.pallas_call(
        functools.partial(_conformer_cat_kernel, nblocks=nblocks),
        out_shape=jax.ShapeDtypeStruct((B, T, nblocks * H), jnp.float32),
        grid=(B,),
        in_specs=[pl.BlockSpec((None, T, Din), lambda b: (b, 0, 0))]
                 + [_full_spec(a) for a in ws],
        out_specs=pl.BlockSpec((None, T, nblocks * H), lambda b: (b, 0, 0)),
        compiler_params=pltpu.CompilerParams(
            dimension_semantics=("parallel",),
            vmem_limit_bytes=_VMEM_LIMIT),
    )(x, *ws)


# ----------------------------------------------------------------------------
# nn.TransformerEncoderLayer (batch_first, post-LN, relu FFN, dropout=identity).
# ----------------------------------------------------------------------------
def _layer_norm(x, w, b, eps=1e-5):
    mu = jnp.mean(x, axis=-1, keepdims=True)
    var = jnp.mean((x - mu) ** 2, axis=-1, keepdims=True)
    return (x - mu) * jax.lax.rsqrt(var + eps) * w + b


def _softmax_rows(s):
    m = jnp.max(s, axis=-1, keepdims=True)
    e = jnp.exp(s - m)
    return e * pl.reciprocal(jnp.sum(e, axis=-1, keepdims=True), approx=True)


def _txf_layer_kernel(x_ref, wqkv_ref, bqkv_ref, wo_ref, bo_ref,
                      ln1w_ref, ln1b_ref, ln2w_ref, ln2b_ref,
                      w1_ref, b1_ref, w2_ref, b2_ref, o_ref, *, nhead):
    x = x_ref[...]                                             # (T, D)
    D = x.shape[-1]
    dh = D // nhead
    qkv = jnp.dot(x, wqkv_ref[...], preferred_element_type=jnp.float32) + bqkv_ref[...]
    q, k, v = qkv[:, :D], qkv[:, D:2 * D], qkv[:, 2 * D:]
    scale = 1.0 / (dh ** 0.5)
    heads = []
    for h in range(nhead):                                     # static head loop
        qh = q[:, h * dh:(h + 1) * dh] * scale
        kh = k[:, h * dh:(h + 1) * dh]
        vh = v[:, h * dh:(h + 1) * dh]
        s = jax.lax.dot_general(qh, kh, (((1,), (1,)), ((), ())),
                                preferred_element_type=jnp.float32)   # (T, T)
        p = _softmax_rows(s)
        heads.append(jnp.dot(p, vh, preferred_element_type=jnp.float32))
    attn = jnp.concatenate(heads, axis=-1)                     # (T, D)
    attn = jnp.dot(attn, wo_ref[...], preferred_element_type=jnp.float32) + bo_ref[...]
    x1 = _layer_norm(x + attn, ln1w_ref[...], ln1b_ref[...])
    h1 = jnp.maximum(
        jnp.dot(x1, w1_ref[...], preferred_element_type=jnp.float32) + b1_ref[...], 0.0)
    ff = jnp.dot(h1, w2_ref[...], preferred_element_type=jnp.float32) + b2_ref[...]
    o_ref[...] = _layer_norm(x1 + ff, ln2w_ref[...], ln2b_ref[...])


def transformer_encoder_layer(x, p, nhead=2):
    B, T, D = x.shape
    names = ("wqkv", "bqkv", "wo", "bo", "ln1w", "ln1b", "ln2w", "ln2b",
             "w1", "b1", "w2", "b2")
    ws = [p[n] for n in names]
    return pl.pallas_call(
        functools.partial(_txf_layer_kernel, nhead=nhead),
        out_shape=jax.ShapeDtypeStruct((B, T, D), jnp.float32),
        grid=(B,),
        in_specs=[pl.BlockSpec((None, T, D), lambda b: (b, 0, 0))]
                 + [_full_spec(a) for a in ws],
        out_specs=pl.BlockSpec((None, T, D), lambda b: (b, 0, 0)),
        compiler_params=pltpu.CompilerParams(
            dimension_semantics=("parallel",),
            vmem_limit_bytes=_VMEM_LIMIT),
    )(x, *ws)


# ----------------------------------------------------------------------------
# AttentiveStatisticsPooling (global_context=True, lengths=None) fused with the
# dropout -> Linear -> GELU -> dropout -> Linear head.  Eval-mode BatchNorm1d
# is folded into a per-channel scale/shift; the (T, 3C) attention-input concat
# is replaced by splitting the TDNN weight into x/mean/std parts.
# ----------------------------------------------------------------------------
def _asp_head_kernel(x_ref, wtx_ref, wtm_ref, wts_ref, bt_ref, bnw_ref, bnb_ref,
                     wa_ref, ba_ref, w1m_ref, w1s_ref, b1_ref, w2_ref, b2_ref,
                     o_ref):
    x = x_ref[...]                                             # (T, C)
    eps = 1e-12
    mean_g = jnp.mean(x, axis=0, keepdims=True)                # (1, C)
    std_g = jnp.sqrt(jnp.maximum(
        jnp.mean((x - mean_g) ** 2, axis=0, keepdims=True), eps))
    h = (jnp.dot(x, wtx_ref[...], preferred_element_type=jnp.float32)
         + jnp.dot(mean_g, wtm_ref[...], preferred_element_type=jnp.float32)
         + jnp.dot(std_g, wts_ref[...], preferred_element_type=jnp.float32)
         + bt_ref[...])                                        # (T, attn_ch)
    h = jnp.maximum(h, 0.0)                                    # TDNNBlock activation
    h = h * bnw_ref[...] + bnb_ref[...]                        # folded eval BatchNorm1d
    h = jnp.tanh(h)
    e = jnp.dot(h, wa_ref[...], preferred_element_type=jnp.float32) + ba_ref[...]
    e = jnp.exp(e - jnp.max(e, axis=0, keepdims=True))
    a = e * pl.reciprocal(jnp.sum(e, axis=0, keepdims=True), approx=True)  # softmax(T)
    mean = jnp.sum(a * x, axis=0, keepdims=True)               # (1, C)
    std = jnp.sqrt(jnp.maximum(
        jnp.sum(a * (x - mean) ** 2, axis=0, keepdims=True), eps))
    # Head epilogue on the pooled stats while they are still in VMEM
    # (Linear over concat(mean, std) == mean @ w1m + std @ w1s).
    hh = (jnp.dot(mean, w1m_ref[...], preferred_element_type=jnp.float32)
          + jnp.dot(std, w1s_ref[...], preferred_element_type=jnp.float32)
          + b1_ref[...])
    hh = jax.nn.gelu(hh, approximate=False)                    # matches F.gelu default
    o_ref[...] = jnp.dot(hh, w2_ref[...], preferred_element_type=jnp.float32) + b2_ref[...]


def asp_head(x, ap, hp):
    B, T, C = x.shape
    ws = (ap["wt_x"], ap["wt_m"], ap["wt_s"], ap["bt"], ap["bnw"], ap["bnb"],
          ap["wa"], ap["ba"], hp["w1m"], hp["w1s"], hp["b1"], hp["w2"], hp["b2"])
    out_dim = hp["w2"].shape[1]
    return pl.pallas_call(
        _asp_head_kernel,
        out_shape=jax.ShapeDtypeStruct((B, out_dim), jnp.float32),
        grid=(B,),
        in_specs=[pl.BlockSpec((None, T, C), lambda b: (b, 0, 0))]
                 + [_full_spec(a) for a in ws],
        out_specs=pl.BlockSpec((1, out_dim), lambda b: (b, 0)),
        compiler_params=pltpu.CompilerParams(
            dimension_semantics=("parallel",),
            vmem_limit_bytes=_VMEM_LIMIT),
    )(x, *ws)


# ----------------------------------------------------------------------------
# AlignSubNet('avg_pool') glue: strided mean down to the text length.
# ----------------------------------------------------------------------------
def align_avg_pool(x, dst_len):
    B, L, D = x.shape
    if L == dst_len:
        return x
    if L % dst_len == 0:
        pad, pool = 0, L // dst_len
    else:
        pad, pool = dst_len - L % dst_len, L // dst_len + 1
    if pad:
        pad_x = jnp.broadcast_to(x[:, -1:, :], (B, pad, D))
        x = jnp.concatenate([x, pad_x], axis=1)
    return x.reshape(B, pool, dst_len, D).mean(axis=1)


# ----------------------------------------------------------------------------
# Parameters (deterministic synthetic init).
# ----------------------------------------------------------------------------
def _lin(key, fan_in, fan_out):
    kw, kb = jax.random.split(key)
    bound = 1.0 / (fan_in ** 0.5)
    w = jax.random.uniform(kw, (fan_in, fan_out), jnp.float32, -bound, bound)
    b = jax.random.uniform(kb, (1, fan_out), jnp.float32, -bound, bound)
    return w, b


def init_params(key, *, text_in, audio_in, video_in, hidden, bert_dim=768,
                nblocks=6, dff=2048, attn_ch=128):
    keys = iter(jax.random.split(key, 64))
    p = {}
    p["bert_w"], p["bert_b"] = _lin(next(keys), text_in, bert_dim)

    def conf(in_dim):
        cp = {}
        cp["in_w"], cp["in_b"] = _lin(next(keys), in_dim, hidden)
        bws, bbs = [], []
        for _ in range(nblocks):
            w, b = _lin(next(keys), hidden, hidden)
            bws.append(w)
            bbs.append(b)
        cp["blk_w"] = jnp.stack(bws, axis=0)       # (nblocks, H, H)
        cp["blk_b"] = jnp.stack(bbs, axis=0)       # (nblocks, 1, H)
        return cp

    p["aconf"] = conf(audio_in)
    p["vconf"] = conf(video_in)

    d_model = hidden * nblocks

    def txf():
        tp = {}
        tp["wqkv"], tp["bqkv"] = _lin(next(keys), d_model, 3 * d_model)
        tp["wo"], tp["bo"] = _lin(next(keys), d_model, d_model)
        tp["ln1w"] = jnp.ones((1, d_model), jnp.float32)
        tp["ln1b"] = jnp.zeros((1, d_model), jnp.float32)
        tp["ln2w"] = jnp.ones((1, d_model), jnp.float32)
        tp["ln2b"] = jnp.zeros((1, d_model), jnp.float32)
        tp["w1"], tp["b1"] = _lin(next(keys), d_model, dff)
        tp["w2"], tp["b2"] = _lin(next(keys), dff, d_model)
        return tp

    p["a_txf"] = txf()
    p["v_txf"] = txf()

    C = 2 * d_model + bert_dim
    ap = {}
    wt, ap["bt"] = _lin(next(keys), 3 * C, attn_ch)
    ap["wt_x"], ap["wt_m"], ap["wt_s"] = wt[:C], wt[C:2 * C], wt[2 * C:]
    # eval-mode BatchNorm1d with running_mean=0, running_var=1, gamma=1, beta=0
    ap["bnw"] = jnp.full((1, attn_ch), 1.0 / (1.0 + 1e-5) ** 0.5, jnp.float32)
    ap["bnb"] = jnp.zeros((1, attn_ch), jnp.float32)
    ap["wa"], ap["ba"] = _lin(next(keys), attn_ch, C)
    p["asp"] = ap

    hp = {}
    w1, hp["b1"] = _lin(next(keys), 2 * C, hidden)
    hp["w1m"], hp["w1s"] = w1[:C], w1[C:]
    hp["w2"], hp["b2"] = _lin(next(keys), hidden, 1)   # regression: output_dim = 1
    p["head"] = hp
    return p


# ----------------------------------------------------------------------------
# Full forward (eval mode: all nn.Dropout layers are identity).
# ----------------------------------------------------------------------------
def avmfa_conformer_forward(params, text_o, audio_o, video_o):
    # TODO(synk): BertTextEncoder (pretrained BERT) has no clean in-script
    # Pallas equivalent; a deterministic row-tiled linear stand-in projecting
    # the text features to 768 is used instead.
    t = pallas_dense(text_o, params["bert_w"], params["bert_b"])          # (B, Tt, 768)

    # TODO(synk): conformer_cat internals (conv2d time subsampling, rel-pos
    # MHSA, conformer conv modules) are not reproduced; each of the 6 blocks is
    # a residual tanh-MLP stand-in, fully fused (including the concat of the 6
    # per-block outputs) into one Pallas kernel per modality.
    a = conformer_cat_fused(audio_o, params["aconf"])                     # (B, Ta, 6H)
    v = conformer_cat_fused(video_o, params["vconf"])                     # (B, Tv, 6H)

    a = transformer_encoder_layer(a, params["a_txf"], nhead=2)
    v = transformer_encoder_layer(v, params["v_txf"], nhead=2)

    # AlignSubNet('avg_pool'): align every modality to the text length.
    dst = t.shape[1]
    t = align_avg_pool(t, dst)
    a = align_avg_pool(a, dst)
    v = align_avg_pool(v, dst)

    x = jnp.concatenate([a, v, t], axis=-1)                               # (B, T, 2*6H+768)
    out = asp_head(x, params["asp"], params["head"])                      # (B, 1)
    return {"M": out}


if __name__ == "__main__":
    key = jax.random.PRNGKey(0)
    B = 2
    Tt, Ta, Tv = 8, 16, 16          # audio/video get avg-pooled down to Tt
    text_in, audio_in, video_in = 16, 12, 20
    hidden = 16                     # -> d_model = 96, fused channels = 960

    kp, kt, ka, kv = jax.random.split(key, 4)
    params = init_params(kp, text_in=text_in, audio_in=audio_in,
                         video_in=video_in, hidden=hidden)
    text_o = jax.random.normal(kt, (B, Tt, text_in), jnp.float32)
    audio_o = jax.random.normal(ka, (B, Ta, audio_in), jnp.float32)
    video_o = jax.random.normal(kv, (B, Tv, video_in), jnp.float32)

    res = avmfa_conformer_forward(params, text_o, audio_o, video_o)
    jax.block_until_ready(res["M"])
    assert res["M"].shape == (B, 1)
    assert bool(jnp.all(jnp.isfinite(res["M"])))
    print("KERNEL_OK")
</pallas_src>

<mosaic_0001>
module attributes {stable_mosaic.version = 11 : i64} {
  func.func @_dense_kernel(%arg0: i32, %arg1: memref<16x16xf32, #tpu.memory_space<vmem>>, %arg2: memref<16x768xf32, #tpu.memory_space<vmem>>, %arg3: memref<1x768xf32, #tpu.memory_space<vmem>>, %arg4: memref<16x768xf32, #tpu.memory_space<vmem>>) attributes {dimension_semantics = [#tpu.dimension_semantics<parallel>], iteration_bounds = array<i64: 1>, scalar_prefetch = 0 : i64, scratch_operands = 0 : i64, tpu.core_type = #tpu.core_type<tc>, window_params = [{transform_indices = @transform_0, window_bounds = array<i64: 16, 16>}, {pipeline_mode = #tpu.pipeline_mode<synchronous>, transform_indices = @transform_1, window_bounds = array<i64: 16, 768>}, {pipeline_mode = #tpu.pipeline_mode<synchronous>, transform_indices = @transform_2, window_bounds = array<i64: 1, 768>}, {transform_indices = @transform_3, window_bounds = array<i64: 16, 768>}]} {
    %c0 = arith.constant 0 : index
    %c0_0 = arith.constant 0 : index
    %0 = vector.load %arg1[%c0, %c0_0] : memref<16x16xf32, #tpu.memory_space<vmem>>, vector<16x16xf32>
    %c0_1 = arith.constant 0 : index
    %c0_2 = arith.constant 0 : index
    %1 = vector.load %arg2[%c0_1, %c0_2] : memref<16x768xf32, #tpu.memory_space<vmem>>, vector<16x768xf32>
    %cst = arith.constant dense<0.000000e+00> : vector<16x768xf32>
    %2 = tpu.matmul %0, %1, %cst {dimension_numbers = #tpu.dot_dimension_numbers<[1], [0], [0], [1], [0, 0, 1, 1], [], []>} : vector<16x16xf32>, vector<16x768xf32>, vector<16x768xf32> -> vector<16x768xf32>
    %c0_3 = arith.constant 0 : index
    %c0_4 = arith.constant 0 : index
    %3 = vector.load %arg3[%c0_3, %c0_4] : memref<1x768xf32, #tpu.memory_space<vmem>>, vector<1x768xf32>
    %4 = vector.broadcast %3 : vector<1x768xf32> to vector<16x768xf32>
    %5 = arith.addf %2, %4 : vector<16x768xf32>
    %c0_5 = arith.constant 0 : index
    %c0_6 = arith.constant 0 : index
    %6 = vector.load %arg4[%c0_5, %c0_6] : memref<16x768xf32, #tpu.memory_space<vmem>>, vector<16x768xf32>
    tpu.vector_store %arg4[%c0_5, %c0_6], %5 {strides = array<i32>} : memref<16x768xf32, #tpu.memory_space<vmem>>, vector<16x768xf32>,
    return
  }
  func.func @transform_0(%arg0: i32) -> (i32, i32) {
    %c0_i32 = arith.constant 0 : i32
    %c0_i32_0 = arith.constant 0 : i32
    return %arg0, %c0_i32 : i32, i32
  }
  func.func @transform_1(%arg0: i32) -> (i32, i32) {
    %c0_i32 = arith.constant 0 : i32
    %c0_i32_0 = arith.constant 0 : i32
    %c0_i32_1 = arith.constant 0 : i32
    return %c0_i32, %c0_i32_0 : i32, i32
  }
  func.func @transform_2(%arg0: i32) -> (i32, i32) {
    %c0_i32 = arith.constant 0 : i32
    %c0_i32_0 = arith.constant 0 : i32
    %c0_i32_1 = arith.constant 0 : i32
    return %c0_i32, %c0_i32_0 : i32, i32
  }
  func.func @transform_3(%arg0: i32) -> (i32, i32) {
    %c0_i32 = arith.constant 0 : i32
    %c0_i32_0 = arith.constant 0 : i32
    return %arg0, %c0_i32 : i32, i32
  }
}

</mosaic_0001>

<bundles_post_ra>
// kernel: tpu_custom_call.1
= control target key start
LH: loop header
LB: loop body
LE: loop exit
PB: predicated region body
PF: predicated region fallthrough
CT: control target
= control target key end

     0   :  { %8 = vsyncpa [#allocation3], 0  ;;  %s536_s0 = inlined_call_operand.hbm [shape: f32[16,16], index: 0, kind: input, shape index: {}]   ;;  %s537_s1 = inlined_call_operand.hbm [shape: f32[16,768], index: 1, kind: input, shape index: {}]   ;;  %s538_s2 = inlined_call_operand.vmem [shape: f32[1,768], index: 2, kind: input, shape index: {}]   ;;  %s539_s3 = inlined_call_operand.hbm [shape: f32[16,768], index: 3, kind: output, shape index: {}]  }
   0x1   :  { %9 = vsyncpa [#allocation6], 0 }
   0x2   :  { %10 = vsyncpa [#allocation4], 0  ;;  %s457_s12 = smov [#allocation2]   ;;  %s385_s16 = scalar_lea.hbm %s536_s0, 256 }
   0x3   :  { %s16_s13 = sshll.u32 %s457_s12, 4  ;;  %p386_p0 = scmp.ne.s32.totalorder %s536_s0, %s385_s16  ;;  %s17_s13 = int_to_ptr.vmem [resolvable:$true] %s16_s13 }
   0x4   :  { %p389_p1 = scmp.lt.u32.totalorder %s385_s16, %s536_s0 }
   0x6   :  { %p391_p2 = pnand %p389_p1, %p386_p0 }
   0x8   :  { %394 = shalt.err (!%p391_p2)
}
   0x9   :  { %s395_s21 = scalar_lea.vmem %s17_s13, 256  ;;  %p400_p4 = scmp.lt.s32.totalorder %s17_s13, %s17_s13 }
   0xa   :  { %p396_p3 = scmp.ne.s32.totalorder %s17_s13, %s395_s21  ;;  %p401_p5 = scmp.lt.s32.totalorder %s395_s21, %s395_s21 }
   0xc   :  { %p402_p6 = por %p401_p5, %p400_p4 }
   0xe   :  { %p403_p7 = pnand %p402_p6, %p396_p3 }
  0x10   :  { %406 = shalt.err (!%p403_p7)
}
  0x11   :  { %s458_s22 = smov 128   ;;  %s459_s23 = smov 8  }
  0x12   :  { %22 = dma.hbm_to_vmem [thread:$0]  %s536_s0, 256, %s17_s13, [#allocation3], %s458_s22, %s458_s22, %s459_s23  }
  0x13   :  { %s460_s26 = smov [#allocation5]   ;;  %s407_s30 = scalar_lea.hbm %s537_s1, 1536 }
  0x14   :  { %s28_s27 = sshll.u32 %s460_s26, 4  ;;  %p408_p8 = scmp.ne.s32.totalorder %s537_s1, %s407_s30  ;;  %s29_s27 = int_to_ptr.vmem [resolvable:$true] %s28_s27 }
  0x15   :  { %p411_p9 = scmp.lt.u32.totalorder %s407_s30, %s537_s1 }
  0x17   :  { %p413_p10 = pnand %p411_p9, %p408_p8 }
  0x19   :  { %416 = shalt.err (!%p413_p10)
}
  0x1a   :  { %s417_s8 = scalar_lea.vmem %s29_s27, 1536  ;;  %p422_p12 = scmp.lt.s32.totalorder %s29_s27, %s29_s27 }
  0x1b   :  { %p418_p11 = scmp.ne.s32.totalorder %s29_s27, %s417_s8  ;;  %p423_p13 = scmp.lt.s32.totalorder %s417_s8, %s417_s8 }
  0x1d   :  { %p424_p0 = por %p423_p13, %p422_p12 }
  0x1f   :  { %p425_p1 = pnand %p424_p0, %p418_p11 }
  0x21   :  { %428 = shalt.err (!%p425_p1)
}
  0x22   :  { %s461_s0 = smov 768   ;;  %s462_s9 = smov 48  }
  0x23   :  { %34 = dma.hbm_to_vmem [thread:$0]  %s537_s1, 1536, %s29_s27, [#allocation6], %s461_s0, %s461_s0, %s462_s9  }
  0x24   :  { %451 = dma.done.wait [#allocation3], 256  }
  0x25   :  { %452 = vsyncadd [#allocation3], 4294967040 }
  0x26   :  { %453 = dma.done.wait [#allocation6], 1536  }
  0x27   :  { %454 = vsyncadd [#allocation6], 4294965760  ;;  %v463_v0 = vmov 0.0   ;;  %v46_v1 = vld [vmem:[#allocation5 + $0x8] sm:$0xff]  ;;  %v52_v2 = vld [vmem:[#allocation5 + $0x38] sm:$0xff]  ;;  %vm89_vm0 = vcmask 130048   ;;  %v59_v21 = vlaneseq }
  0x28   :  { %160 = vmatprep.mubr.f32.mxu0 %v463_v0  ;;  %166 = vmatprep.mubr.f32.mxu1 %v463_v0  ;;  %v45_v3 = vld [vmem:[#allocation5] sm:$0xff]  ;;  %v363_v4 = vpack.c.bf16 %v52_v2, %v46_v1  ;;  %v51_v5 = vld [vmem:[#allocation5 + $0x30] sm:$0xff]  ;;  %v48_v8 = vld [vmem:[#allocation5 + $0x18] sm:$0xff] }
  0x29   :  { %v365_v6 = vpack.c.bf16 %v51_v5, %v45_v3  ;;  %v43_v7 = vld [vmem:[#allocation2] sm:$0xff]  ;;  %v54_v9 = vld [vmem:[#allocation5 + $0x48] sm:$0xff]  ;;  %v56_v12 = vld [vmem:[#allocation5 + $0x58] sm:$0xff]  ;;  %v60_v22 = vshrl.u32 %v59_v21, 7 }
  0x2a   :  { %v50_v10 = vld [vmem:[#allocation5 + $0x28] sm:$0xff]  ;;  %364 = vmatprep.subr.bf16.mxu0 %v363_v4  ;;  %375 = vmatprep.subr.bf16.mxu1 %v363_v4  ;;  %v367_v11 = vpack.c.bf16 %v54_v9, %v48_v8  ;;  %v47_v13 = vld [vmem:[#allocation5 + $0x10] sm:$0xff]  ;;  %v53_v14 = vld [vmem:[#allocation5 + $0x40] sm:$0xff] }
  0x2b   :  { %366 = vmatpush1.bf16.msra.mxu0 %v365_v6  ;;  %376 = vmatpush1.bf16.msra.mxu1 %v365_v6  ;;  %v44_v15 = vld [vmem:[#allocation2 + $0x8] sm:$0xff]  ;;  %v371_v16 = vpack.c.bf16 %v56_v12, %v50_v10  ;;  %v369_v17 = vpack.c.bf16 %v53_v14, %v47_v13  ;;  %v49_v18 = vld [vmem:[#allocation5 + $0x20] sm:$0xff]  ;;  %v55_v19 = vld [vmem:[#allocation5 + $0x50] sm:$0xff]  ;;  %v61_v23 = vsub.s32 0, %v60_v22  ;;  %v65_v25 = vsub.s32 1, %v60_v22 }
  0x2c   :  { %368 = vmatprep.subr.bf16.mxu1 %v367_v11  ;;  %v373_v20 = vpack.c.bf16 %v55_v19, %v49_v18  ;;  %v57_v24 = vld [vmem:[%s538_s2] sm:$0x3f]  ;;  %v69_v27 = vsub.s32 2, %v60_v22  ;;  %v77_v28 = vsub.s32 4, %v60_v22  ;;  %v73_v30 = vsub.s32 3, %v60_v22  ;;  %s464_s2 = smov [#allocation7]  }
  0x2d   :  { %372 = vmatprep.subr.bf16.mxu0 %v371_v16  ;;  %v62_v26 = vrot.slane %v57_v24, %v61_v23  ;;  %v66_v29 = vrot.slane %v57_v24, %v65_v25  ;;  %v81_v31 = vsub.s32 5, %v60_v22  ;;  %s344_s13 = sshll.u32 %s464_s2, 4  ;;  %s345_s13 = int_to_ptr.vmem [resolvable:$true] %s344_s13 }
  0x2e   :  { %357 = vmatmul.mubr.msk.f32.vlgmr.msra.gmra.mrb[0].mxu0 %vm89_vm0, %v43_v7  ;;  %358 = vmatmul.mubr.msk.f32.vlgmr.msra.gmra.mrb[0].mxu1 %vm89_vm0, %v44_v15  ;;  %v70_v38 = vrot.slane %v57_v24, %v69_v27  ;;  %v78_v39 = vrot.slane %v57_v24, %v77_v28  ;;  %v74_v42 = vrot.slane %v57_v24, %v73_v30  ;;  %s429_s14 = scalar_lea.vmem %s345_s13, 1536  ;;  %p434_p3 = scmp.lt.s32.totalorder %s345_s13, %s345_s13 }
  0x2f   :  { %370 = vmatpush1.bf16.msra.mxu1 %v369_v17  ;;  %374 = vmatpush1.bf16.msra.mxu0 %v373_v20  ;;  %v82_v43 = vrot.slane %v57_v24, %v81_v31  ;;  %p430_p2 = scmp.ne.s32.totalorder %s345_s13, %s429_s14  ;;  %p435_p4 = scmp.lt.s32.totalorder %s429_s14, %s429_s14 }
  0x30   :  { %237 = vmatprep.mubr.f32.mxu1 %v463_v0  ;;  %314 = vmatprep.mubr.f32.mxu0 %v463_v0 }
  0x31   :  { %p436_p5 = por %p435_p4, %p434_p3 }
  0x32   :  { %359 = vmatmul.mubr.msk.f32.vlgmr.msra.gmra.mrb[2].mxu1 %vm89_vm0, %v43_v7  ;;  %361 = vmatmul.mubr.msk.f32.vlgmr.msra.gmra.mrb[2].mxu0 %vm89_vm0, %v43_v7 }
  0x33   :  { %243 = vmatprep.mubr.f32.mxu1 %v463_v0  ;;  %320 = vmatprep.mubr.f32.mxu0 %v463_v0  ;;  %p437_p6 = pnand %p436_p5, %p430_p2 }
  0x36   :  { %360 = vmatmul.mubr.msk.f32.gmra.mrb[4].mxu1 %vm89_vm0, %v44_v15  ;;  %362 = vmatmul.mubr.msk.f32.gmra.mrb[4].mxu0 %vm89_vm0, %v44_v15 }
 0x101   :  { %v162_v32 = vpop.f32.mrb[0].mxu0  ;;  %v168_v33 = vpop.f32.mrb[0].mxu1 }
 0x102   :  { %v163_v34 = vadd.f32 %v162_v32, %v62_v26  ;;  %v169_v35 = vadd.f32 %v168_v33, %v62_v26  ;;  %v164_v36 = vpop.f32.mrb[1].mxu0  ;;  %v170_v37 = vpop.f32.mrb[1].mxu1 }
 0x103   :  { %v165_v40 = vadd.f32 %v164_v36, %v66_v29  ;;  %v171_v41 = vadd.f32 %v170_v37, %v66_v29 }
 0x104   :  { %327 = vst [vmem:[#allocation7] sm:$0xff] %v163_v34  ;;  %333 = vst [vmem:[#allocation7 + $0x30] sm:$0xff] %v169_v35 }
 0x105   :  { %328 = vst [vmem:[#allocation7 + $0x8] sm:$0xff] %v165_v40  ;;  %334 = vst [vmem:[#allocation7 + $0x38] sm:$0xff] %v171_v41  ;;  %v239_v44 = vpop.f32.mrb[2].mxu1  ;;  %v316_v45 = vpop.f32.mrb[2].mxu0 }
 0x106   :  { %v240_v46 = vadd.f32 %v239_v44, %v70_v38  ;;  %v317_v47 = vadd.f32 %v316_v45, %v78_v39  ;;  %v241_v48 = vpop.f32.mrb[3].mxu1  ;;  %v318_v49 = vpop.f32.mrb[3].mxu0 }
 0x107   :  { %v242_v50 = vadd.f32 %v241_v48, %v74_v42  ;;  %v319_v51 = vadd.f32 %v318_v49, %v82_v43 }
 0x108   :  { %329 = vst [vmem:[#allocation7 + $0x10] sm:$0xff] %v240_v46  ;;  %331 = vst [vmem:[#allocation7 + $0x20] sm:$0xff] %v317_v47 }
 0x109   :  { %330 = vst [vmem:[#allocation7 + $0x18] sm:$0xff] %v242_v50  ;;  %332 = vst [vmem:[#allocation7 + $0x28] sm:$0xff] %v319_v51  ;;  %v245_v52 = vpop.f32.mrb[4].mxu1  ;;  %v322_v53 = vpop.f32.mrb[4].mxu0 }
 0x10a   :  { %v246_v54 = vadd.f32 %v245_v52, %v70_v38  ;;  %v323_v55 = vadd.f32 %v322_v53, %v78_v39  ;;  %v247_v56 = vpop.f32.mrb[5].mxu1  ;;  %v324_v57 = vpop.f32.mrb[5].mxu0 }
 0x10b   :  { %v248_v58 = vadd.f32 %v247_v56, %v74_v42  ;;  %v325_v59 = vadd.f32 %v324_v57, %v82_v43 }
 0x10c   :  { %335 = vst [vmem:[#allocation7 + $0x40] sm:$0xff] %v246_v54  ;;  %337 = vst [vmem:[#allocation7 + $0x50] sm:$0xff] %v323_v55 }
 0x10d   :  { %336 = vst [vmem:[#allocation7 + $0x48] sm:$0xff] %v248_v58  ;;  %338 = vst [vmem:[#allocation7 + $0x58] sm:$0xff] %v325_v59 }
 0x10e   :  { %440 = shalt.err (!%p437_p6)
}
 0x10f   :  { %s441_s17 = scalar_lea.hbm %s539_s3, 1536 }
 0x110   :  { %p442_p7 = scmp.ne.s32.totalorder %s539_s3, %s441_s17  ;;  %p445_p8 = scmp.lt.u32.totalorder %s441_s17, %s539_s3 }
 0x112   :  { %p447_p9 = pnand %p445_p8, %p442_p7 }
 0x114   :  { %450 = shalt.err (!%p447_p9)
}
 0x115   :  { %350 = dma.vmem_to_hbm [thread:$0]  %s345_s13, 1536, %s539_s3, [#allocation4], %s461_s0, %s461_s0, %s462_s9  }
 0x116   :  { %455 = dma.done.wait [#allocation4], 1536  }
 0x117   :  { %456 = vsyncadd [#allocation4], 4294965760 }
 0x118   :  { %354 = vsyncpa [#allocation3], 1 }
 0x119   :  { %355 = vsyncpa [#allocation6], 1 }
 0x11a   :  { %356 = vsyncpa [#allocation4], 1 }

</bundles_post_ra>
